<compile_context>
chip_gen: v7x
topology: tpu7x:2x2x1
jax: 0.10.0
libtpu: 0.0.40
codegen_flags: <defaults>
</compile_context>

<pallas_src>
import jax
import jax.numpy as jnp
import numpy as np
from jax.experimental import pallas as pl
from jax.experimental.pallas import tpu as pltpu

BN_EPS = 1e-5


# ---------------------------------------------------------------------------
# Kernel A: transposed conv (single K=4*Cin matmul) + per-image BN partials
# ---------------------------------------------------------------------------
def _make_conv_stats_kernel(cin, wp, lo):
    # Tap order matches w_cat column order (k = kh*2 + kw); flat shift of tap
    # (kh, kw) over the row-stride-Wp padded layout is (1-kh)*Wp + (1-kw).
    shifts = (wp + 1, wp, 1, 0)

    def kernel(xpf_ref, w_ref, y_ref, stat_ref, xs_ref):
        # xpf_ref : (1, Cin, Lp)   padded, upsampled image (flat spatial)
        # w_ref   : (Cout, 4*Cin)  concatenated transposed-conv weights (f32)
        # y_ref   : (1, Cout, Lo)  conv output, flat row-stride-Wp layout (f32)
        # stat_ref: (1, Cout, 2)   per-image (sum, sum_sq) partials (f32)
        # xs_ref  : (4*Cin, Lo)    f32 scratch holding the gathered taps
        for k, sh in enumerate(shifts):
            xs_ref[k * cin:(k + 1) * cin, :] = (
                xpf_ref[0, :, sh:sh + lo].astype(jnp.float32))
        acc = jnp.dot(w_ref[...], xs_ref[...],
                      preferred_element_type=jnp.float32)        # (Cout, Lo)
        y_ref[0] = acc
        # The padded columns of every row see only zero padding, so they are
        # exactly 0 and plain sums equal the valid-position statistics.
        stat_ref[0, :, 0:1] = jnp.sum(acc, axis=1, keepdims=True)
        stat_ref[0, :, 1:2] = jnp.sum(acc * acc, axis=1, keepdims=True)

    return kernel


# ---------------------------------------------------------------------------
# Kernel B: per-channel affine (folded BN) + ReLU, writes exact NCHW output
# ---------------------------------------------------------------------------
def _make_bn_relu_kernel(wo):
    def kernel(y_ref, scale_ref, bias_ref, o_ref):
        # y_ref    : (1, Cout, TR, Wp)  conv-output rows (row-padded layout)
        # scale_ref: (Cout, 1, Wo)      gamma * rsqrt(var + eps)
        # bias_ref : (Cout, 1, Wo)      beta - mean * scale
        # o_ref    : (1, Cout, TR, Wo)  final NCHW output rows
        y = y_ref[0, :, :, 0:wo]
        o_ref[0] = jnp.maximum(y * scale_ref[...] + bias_ref[...],
                               0.0).astype(o_ref.dtype)

    return kernel


def up_conv(x, w, gamma, beta, *, input_dtype=None, block_rows=64):
    """Fused Up_conv forward.

    x: (N, Cin, H, W) NCHW.  w: (Cin, Cout, 2, 2) (PyTorch ConvTranspose2d).
    gamma/beta: (Cout,) BatchNorm2d affine parameters.
    Returns (N, Cout, 2H+1, 2W+1) NCHW with x.dtype.

    input_dtype: optional dtype (e.g. jnp.bfloat16) used only for feeding the
    padded activation to the kernel; accumulation and BN math stay f32.
    """
    N, Cin, H, W = x.shape
    Cout = w.shape[1]
    in_dt = x.dtype if input_dtype is None else input_dtype

    Hu, Wu = 2 * H, 2 * W          # upsampled size
    Ho, Wo = Hu + 1, Wu + 1        # transposed-conv output size
    Wp = Wu + 3                    # row stride of the padded flat layout
    Lo = Ho * Wp                   # flat conv-output length per image
    Lp = (Ho + 2) * Wp             # flat padded-input length per image

    # ---- glue: nearest-x2 upsample + zero halo; stays NCHW; flattened ------
    x_up = jnp.repeat(jnp.repeat(x, 2, axis=2), 2, axis=3)       # (N,Cin,Hu,Wu)
    x_pad = jnp.pad(x_up, ((0, 0), (0, 0), (1, 2), (1, 2)))      # (N,Cin,Ho+2,Wp)
    xpf = x_pad.reshape(N, Cin, Lp).astype(in_dt)

    # w_cat[co, (kh*2+kw)*Cin + ci] = w[ci, co, kh, kw]
    w_cat = jnp.transpose(w, (1, 2, 3, 0)).reshape(Cout, 4 * Cin)
    w_cat = w_cat.astype(jnp.float32)

    # ---- pass 1: conv + per-image BN partial sums ---------------------------
    conv_kernel = _make_conv_stats_kernel(Cin, Wp, Lo)
    y_flat, stats = pl.pallas_call(
        conv_kernel,
        out_shape=(jax.ShapeDtypeStruct((N, Cout, Lo), jnp.float32),
                   jax.ShapeDtypeStruct((N, Cout, 2), jnp.float32)),
        grid_spec=pltpu.PrefetchScalarGridSpec(
            num_scalar_prefetch=0,
            grid=(N,),
            in_specs=[
                pl.BlockSpec((1, Cin, Lp), lambda n: (n, 0, 0)),
                pl.BlockSpec((Cout, 4 * Cin), lambda n: (0, 0)),
            ],
            out_specs=[
                pl.BlockSpec((1, Cout, Lo), lambda n: (n, 0, 0)),
                pl.BlockSpec((1, Cout, 2), lambda n: (n, 0, 0)),
            ],
            scratch_shapes=[pltpu.VMEM((4 * Cin, Lo), jnp.float32)],
        ),
        compiler_params=pltpu.CompilerParams(
            dimension_semantics=("parallel",)),
    )(xpf, w_cat)

    # ---- combine BN statistics (tiny, per-channel, in XLA) ------------------
    count = float(N * Ho * Wo)
    s = jnp.sum(stats, axis=0)                               # (Cout, 2)
    mean = s[:, 0] / count
    var = jnp.maximum(s[:, 1] / count - mean * mean, 0.0)    # biased variance
    scale = gamma.astype(jnp.float32) * jax.lax.rsqrt(var + BN_EPS)
    bias = beta.astype(jnp.float32) - mean * scale
    scale_b = jnp.broadcast_to(scale.reshape(Cout, 1, 1), (Cout, 1, Wo))
    bias_b = jnp.broadcast_to(bias.reshape(Cout, 1, 1), (Cout, 1, Wo))

    # ---- pass 2: y*scale + bias, ReLU, exact NCHW output --------------------
    y4 = y_flat.reshape(N, Cout, Ho, Wp)          # free view of pass-1 output
    TR = Ho if Ho <= block_rows else block_rows   # row tile (full or mult. of 8)
    nR = pl.cdiv(Ho, TR)
    bn_kernel = _make_bn_relu_kernel(Wo)
    out = pl.pallas_call(
        bn_kernel,
        out_shape=jax.ShapeDtypeStruct((N, Cout, Ho, Wo), x.dtype),
        grid_spec=pltpu.PrefetchScalarGridSpec(
            num_scalar_prefetch=0,
            grid=(N, nR),
            in_specs=[
                pl.BlockSpec((1, Cout, TR, Wp), lambda n, r: (n, 0, r, 0)),
                pl.BlockSpec((Cout, 1, Wo), lambda n, r: (0, 0, 0)),
                pl.BlockSpec((Cout, 1, Wo), lambda n, r: (0, 0, 0)),
            ],
            out_specs=pl.BlockSpec((1, Cout, TR, Wo),
                                   lambda n, r: (n, 0, r, 0)),
        ),
        compiler_params=pltpu.CompilerParams(
            dimension_semantics=("parallel", "parallel")),
    )(y4, scale_b, bias_b)
    return out


def up_conv_reference(x, w, gamma, beta):
    """Pure-JAX reference following the transposed-conv scatter definition."""
    N, Cin, H, W = x.shape
    Cout = w.shape[1]
    x_up = jnp.repeat(jnp.repeat(x, 2, axis=2), 2, axis=3)
    Hu, Wu = 2 * H, 2 * W
    Ho, Wo = Hu + 1, Wu + 1
    y = jnp.zeros((N, Cout, Ho, Wo), jnp.float32)
    for kh in range(2):
        for kw in range(2):
            contrib = jnp.einsum('nchw,cd->ndhw', x_up, w[:, :, kh, kw],
                                 precision=jax.lax.Precision.HIGHEST)
            y = y.at[:, :, kh:kh + Hu, kw:kw + Wu].add(contrib)
    mean = jnp.mean(y, axis=(0, 2, 3), keepdims=True)
    var = jnp.mean(jnp.square(y - mean), axis=(0, 2, 3), keepdims=True)
    yhat = (y - mean) * jax.lax.rsqrt(var + BN_EPS)
    yhat = yhat * gamma.reshape(1, Cout, 1, 1) + beta.reshape(1, Cout, 1, 1)
    return jnp.maximum(yhat, 0.0)


if __name__ == "__main__":
    key = jax.random.PRNGKey(0)
    kx, kw = jax.random.split(key)

    N, Cin, Cout, H, W = 2, 4, 8, 16, 16
    x = jax.random.normal(kx, (N, Cin, H, W), jnp.float32)
    # ConvTranspose2d weight shape: (in_channels, out_channels, kH, kW)
    w = 0.1 * jax.random.normal(kw, (Cin, Cout, 2, 2), jnp.float32)
    gamma = jnp.ones((Cout,), jnp.float32)   # BatchNorm2d default init
    beta = jnp.zeros((Cout,), jnp.float32)

    ref = up_conv_reference(x, w, gamma, beta)

    # f32 path: strict check.
    out = jax.block_until_ready(jax.jit(up_conv)(x, w, gamma, beta))
    np.testing.assert_allclose(np.asarray(out), np.asarray(ref),
                               rtol=1e-4, atol=1e-4)

    # bf16-fed path (halves activation HBM read bytes; f32 accumulation/BN).
    out_bf16 = jax.block_until_ready(
        jax.jit(lambda a, b, c, d: up_conv(a, b, c, d,
                                           input_dtype=jnp.bfloat16))(
            x, w, gamma, beta))
    np.testing.assert_allclose(np.asarray(out_bf16), np.asarray(ref),
                               rtol=5e-2, atol=5e-2)

    print("KERNEL_OK")
</pallas_src>

<mosaic_0001>
module attributes {stable_mosaic.version = 11 : i64} {
  func.func @kernel(%arg0: i32, %arg1: memref<1x4x1225xf32, #tpu.memory_space<vmem>>, %arg2: memref<8x16xf32, #tpu.memory_space<vmem>>, %arg3: memref<1x8x1155xf32, #tpu.memory_space<vmem>>, %arg4: memref<1x8x2xf32, #tpu.memory_space<vmem>>, %arg5: memref<16x1155xf32, #tpu.memory_space<vmem>>) attributes {dimension_semantics = [#tpu.dimension_semantics<parallel>], iteration_bounds = array<i64: 2>, scalar_prefetch = 0 : i64, scratch_operands = 1 : i64, tpu.core_type = #tpu.core_type<tc>, window_params = [{transform_indices = @transform_0, window_bounds = array<i64: 1, 4, 1225>}, {pipeline_mode = #tpu.pipeline_mode<synchronous>, transform_indices = @transform_1, window_bounds = array<i64: 8, 16>}, {transform_indices = @transform_2, window_bounds = array<i64: 1, 8, 1155>}, {transform_indices = @transform_3, window_bounds = array<i64: 1, 8, 2>}]} {
    %c0 = arith.constant 0 : index
    %c0_0 = arith.constant 0 : index
    %c36 = arith.constant 36 : index
    %0 = vector.load %arg1[%c0, %c0_0, %c36] : memref<1x4x1225xf32, #tpu.memory_space<vmem>>, vector<1x4x1155xf32>
    %1 = vector.shape_cast %0 : vector<1x4x1155xf32> to vector<4x1155xf32>
    %c0_1 = arith.constant 0 : index
    %c0_2 = arith.constant 0 : index
    %2 = vector.load %arg5[%c0_1, %c0_2] : memref<16x1155xf32, #tpu.memory_space<vmem>>, vector<4x1155xf32>
    tpu.vector_store %arg5[%c0_1, %c0_2], %1 {strides = array<i32>} : memref<16x1155xf32, #tpu.memory_space<vmem>>, vector<4x1155xf32>,
    %c0_3 = arith.constant 0 : index
    %c0_4 = arith.constant 0 : index
    %c35 = arith.constant 35 : index
    %3 = vector.load %arg1[%c0_3, %c0_4, %c35] : memref<1x4x1225xf32, #tpu.memory_space<vmem>>, vector<1x4x1155xf32>
    %4 = vector.shape_cast %3 : vector<1x4x1155xf32> to vector<4x1155xf32>
    %c4 = arith.constant 4 : index
    %c0_5 = arith.constant 0 : index
    %5 = vector.load %arg5[%c4, %c0_5] : memref<16x1155xf32, #tpu.memory_space<vmem>>, vector<4x1155xf32>
    tpu.vector_store %arg5[%c4, %c0_5], %4 {strides = array<i32>} : memref<16x1155xf32, #tpu.memory_space<vmem>>, vector<4x1155xf32>,
    %c0_6 = arith.constant 0 : index
    %c0_7 = arith.constant 0 : index
    %c1 = arith.constant 1 : index
    %6 = vector.load %arg1[%c0_6, %c0_7, %c1] : memref<1x4x1225xf32, #tpu.memory_space<vmem>>, vector<1x4x1155xf32>
    %7 = vector.shape_cast %6 : vector<1x4x1155xf32> to vector<4x1155xf32>
    %c8 = arith.constant 8 : index
    %c0_8 = arith.constant 0 : index
    %8 = vector.load %arg5[%c8, %c0_8] : memref<16x1155xf32, #tpu.memory_space<vmem>>, vector<4x1155xf32>
    tpu.vector_store %arg5[%c8, %c0_8], %7 {strides = array<i32>} : memref<16x1155xf32, #tpu.memory_space<vmem>>, vector<4x1155xf32>,
    %c0_9 = arith.constant 0 : index
    %c0_10 = arith.constant 0 : index
    %c0_11 = arith.constant 0 : index
    %9 = vector.load %arg1[%c0_9, %c0_10, %c0_11] : memref<1x4x1225xf32, #tpu.memory_space<vmem>>, vector<1x4x1155xf32>
    %10 = vector.shape_cast %9 : vector<1x4x1155xf32> to vector<4x1155xf32>
    %c12 = arith.constant 12 : index
    %c0_12 = arith.constant 0 : index
    %11 = vector.load %arg5[%c12, %c0_12] : memref<16x1155xf32, #tpu.memory_space<vmem>>, vector<4x1155xf32>
    tpu.vector_store %arg5[%c12, %c0_12], %10 {strides = array<i32>} : memref<16x1155xf32, #tpu.memory_space<vmem>>, vector<4x1155xf32>,
    %c0_13 = arith.constant 0 : index
    %c0_14 = arith.constant 0 : index
    %12 = vector.load %arg2[%c0_13, %c0_14] : memref<8x16xf32, #tpu.memory_space<vmem>>, vector<8x16xf32>
    %c0_15 = arith.constant 0 : index
    %c0_16 = arith.constant 0 : index
    %13 = vector.load %arg5[%c0_15, %c0_16] : memref<16x1155xf32, #tpu.memory_space<vmem>>, vector<16x1155xf32>
    %cst = arith.constant dense<0.000000e+00> : vector<8x1155xf32>
    %14 = tpu.matmul %12, %13, %cst {dimension_numbers = #tpu.dot_dimension_numbers<[1], [0], [0], [1], [0, 0, 1, 1], [], []>} : vector<8x16xf32>, vector<16x1155xf32>, vector<8x1155xf32> -> vector<8x1155xf32>
    %c0_17 = arith.constant 0 : index
    %c0_18 = arith.constant 0 : index
    %c0_19 = arith.constant 0 : index
    %15 = vector.load %arg3[%c0_17, %c0_18, %c0_19] : memref<1x8x1155xf32, #tpu.memory_space<vmem>>, vector<1x8x1155xf32>
    %16 = vector.shape_cast %15 : vector<1x8x1155xf32> to vector<8x1155xf32>
    %17 = vector.shape_cast %14 : vector<8x1155xf32> to vector<1x8x1155xf32>
    tpu.vector_store %arg3[%c0_17, %c0_18, %c0_19], %17 {strides = array<i32>} : memref<1x8x1155xf32, #tpu.memory_space<vmem>>, vector<1x8x1155xf32>,
    %cst_20 = arith.constant dense<0.000000e+00> : vector<8xf32>
    %18 = vector.multi_reduction <add>, %14, %cst_20 [1] : vector<8x1155xf32> to vector<8xf32>
    %19 = vector.shape_cast %18 : vector<8xf32> to vector<8x1xf32>
    %c0_21 = arith.constant 0 : index
    %c0_22 = arith.constant 0 : index
    %c0_23 = arith.constant 0 : index
    %20 = vector.load %arg4[%c0_21, %c0_22, %c0_23] : memref<1x8x2xf32, #tpu.memory_space<vmem>>, vector<1x8x1xf32>
    %21 = vector.shape_cast %20 : vector<1x8x1xf32> to vector<8x1xf32>
    %22 = vector.shape_cast %19 : vector<8x1xf32> to vector<1x8x1xf32>
    tpu.vector_store %arg4[%c0_21, %c0_22, %c0_23], %22 {strides = array<i32>} : memref<1x8x2xf32, #tpu.memory_space<vmem>>, vector<1x8x1xf32>,
    %23 = arith.mulf %14, %14 : vector<8x1155xf32>
    %cst_24 = arith.constant dense<0.000000e+00> : vector<8xf32>
    %24 = vector.multi_reduction <add>, %23, %cst_24 [1] : vector<8x1155xf32> to vector<8xf32>
    %25 = vector.shape_cast %24 : vector<8xf32> to vector<8x1xf32>
    %c0_25 = arith.constant 0 : index
    %c0_26 = arith.constant 0 : index
    %c1_27 = arith.constant 1 : index
    %26 = vector.load %arg4[%c0_25, %c0_26, %c1_27] : memref<1x8x2xf32, #tpu.memory_space<vmem>>, vector<1x8x1xf32>
    %27 = vector.shape_cast %26 : vector<1x8x1xf32> to vector<8x1xf32>
    %28 = vector.shape_cast %25 : vector<8x1xf32> to vector<1x8x1xf32>
    tpu.vector_store %arg4[%c0_25, %c0_26, %c1_27], %28 {strides = array<i32>} : memref<1x8x2xf32, #tpu.memory_space<vmem>>, vector<1x8x1xf32>,
    return
  }
  func.func @transform_0(%arg0: i32) -> (i32, i32, i32) {
    %c0_i32 = arith.constant 0 : i32
    %c0_i32_0 = arith.constant 0 : i32
    %c0_i32_1 = arith.constant 0 : i32
    return %arg0, %c0_i32, %c0_i32_0 : i32, i32, i32
  }
  func.func @transform_1(%arg0: i32) -> (i32, i32) {
    %c0_i32 = arith.constant 0 : i32
    %c0_i32_0 = arith.constant 0 : i32
    %c0_i32_1 = arith.constant 0 : i32
    return %c0_i32, %c0_i32_0 : i32, i32
  }
  func.func @transform_2(%arg0: i32) -> (i32, i32, i32) {
    %c0_i32 = arith.constant 0 : i32
    %c0_i32_0 = arith.constant 0 : i32
    %c0_i32_1 = arith.constant 0 : i32
    return %arg0, %c0_i32, %c0_i32_0 : i32, i32, i32
  }
  func.func @transform_3(%arg0: i32) -> (i32, i32, i32) {
    %c0_i32 = arith.constant 0 : i32
    %c0_i32_0 = arith.constant 0 : i32
    %c0_i32_1 = arith.constant 0 : i32
    return %arg0, %c0_i32, %c0_i32_0 : i32, i32, i32
  }
}

module attributes {stable_mosaic.version = 11 : i64} {
  func.func @kernel(%arg0: i32, %arg1: i32, %arg2: memref<1x8x33x35xf32, #tpu.memory_space<vmem>>, %arg3: memref<8x1x33xf32, #tpu.memory_space<vmem>>, %arg4: memref<8x1x33xf32, #tpu.memory_space<vmem>>, %arg5: memref<1x8x33x33xf32, #tpu.memory_space<vmem>>) attributes {dimension_semantics = [#tpu.dimension_semantics<parallel>, #tpu.dimension_semantics<parallel>], iteration_bounds = array<i64: 2, 1>, scalar_prefetch = 0 : i64, scratch_operands = 0 : i64, tpu.core_type = #tpu.core_type<tc>, window_params = [{transform_indices = @transform_0, window_bounds = array<i64: 1, 8, 33, 35>}, {pipeline_mode = #tpu.pipeline_mode<synchronous>, transform_indices = @transform_1, window_bounds = array<i64: 8, 1, 33>}, {pipeline_mode = #tpu.pipeline_mode<synchronous>, transform_indices = @transform_2, window_bounds = array<i64: 8, 1, 33>}, {transform_indices = @transform_3, window_bounds = array<i64: 1, 8, 33, 33>}]} {
    %c0 = arith.constant 0 : index
    %c0_0 = arith.constant 0 : index
    %c0_1 = arith.constant 0 : index
    %c0_2 = arith.constant 0 : index
    %0 = vector.load %arg2[%c0, %c0_0, %c0_1, %c0_2] : memref<1x8x33x35xf32, #tpu.memory_space<vmem>>, vector<1x8x33x33xf32>
    %1 = vector.shape_cast %0 : vector<1x8x33x33xf32> to vector<8x33x33xf32>
    %c0_3 = arith.constant 0 : index
    %c0_4 = arith.constant 0 : index
    %c0_5 = arith.constant 0 : index
    %2 = vector.load %arg3[%c0_3, %c0_4, %c0_5] : memref<8x1x33xf32, #tpu.memory_space<vmem>>, vector<8x1x33xf32>
    %3 = vector.broadcast %2 : vector<8x1x33xf32> to vector<8x33x33xf32>
    %4 = arith.mulf %1, %3 : vector<8x33x33xf32>
    %c0_6 = arith.constant 0 : index
    %c0_7 = arith.constant 0 : index
    %c0_8 = arith.constant 0 : index
    %5 = vector.load %arg4[%c0_6, %c0_7, %c0_8] : memref<8x1x33xf32, #tpu.memory_space<vmem>>, vector<8x1x33xf32>
    %6 = vector.broadcast %5 : vector<8x1x33xf32> to vector<8x33x33xf32>
    %7 = arith.addf %4, %6 : vector<8x33x33xf32>
    %cst = arith.constant 0.000000e+00 : f32
    %8 = vector.broadcast %cst : f32 to vector<8x33x33xf32>
    %9 = arith.maximumf %7, %8 : vector<8x33x33xf32>
    %c0_9 = arith.constant 0 : index
    %c0_10 = arith.constant 0 : index
    %c0_11 = arith.constant 0 : index
    %c0_12 = arith.constant 0 : index
    %10 = vector.load %arg5[%c0_9, %c0_10, %c0_11, %c0_12] : memref<1x8x33x33xf32, #tpu.memory_space<vmem>>, vector<1x8x33x33xf32>
    %11 = vector.shape_cast %10 : vector<1x8x33x33xf32> to vector<8x33x33xf32>
    %12 = vector.shape_cast %9 : vector<8x33x33xf32> to vector<1x8x33x33xf32>
    tpu.vector_store %arg5[%c0_9, %c0_10, %c0_11, %c0_12], %12 {strides = array<i32>} : memref<1x8x33x33xf32, #tpu.memory_space<vmem>>, vector<1x8x33x33xf32>,
    return
  }
  func.func @transform_0(%arg0: i32, %arg1: i32) -> (i32, i32, i32, i32) {
    %c0_i32 = arith.constant 0 : i32
    %c0_i32_0 = arith.constant 0 : i32
    %c0_i32_1 = arith.constant 0 : i32
    return %arg0, %c0_i32, %arg1, %c0_i32_0 : i32, i32, i32, i32
  }
  func.func @transform_1(%arg0: i32, %arg1: i32) -> (i32, i32, i32) {
    %c0_i32 = arith.constant 0 : i32
    %c0_i32_0 = arith.constant 0 : i32
    %c0_i32_1 = arith.constant 0 : i32
    %c0_i32_2 = arith.constant 0 : i32
    return %c0_i32, %c0_i32_0, %c0_i32_1 : i32, i32, i32
  }
  func.func @transform_2(%arg0: i32, %arg1: i32) -> (i32, i32, i32) {
    %c0_i32 = arith.constant 0 : i32
    %c0_i32_0 = arith.constant 0 : i32
    %c0_i32_1 = arith.constant 0 : i32
    %c0_i32_2 = arith.constant 0 : i32
    return %c0_i32, %c0_i32_0, %c0_i32_1 : i32, i32, i32
  }
  func.func @transform_3(%arg0: i32, %arg1: i32) -> (i32, i32, i32, i32) {
    %c0_i32 = arith.constant 0 : i32
    %c0_i32_0 = arith.constant 0 : i32
    %c0_i32_1 = arith.constant 0 : i32
    return %arg0, %c0_i32, %arg1, %c0_i32_0 : i32, i32, i32, i32
  }
}

</mosaic_0001>

<bundles_post_ra>
// kernel: up_conv.2
= control target key start
LH: loop header
LB: loop body
LE: loop exit
PB: predicated region body
PF: predicated region fallthrough
CT: control target
= control target key end

     0   :  { %s1015_s12 = smov 0   ;;  %s1133_s0 = inlined_call_operand.vmem [shape: f32[2,4,1225], index: 0, kind: input, shape index: {}]   ;;  %s1134_s1 = inlined_call_operand.vmem [shape: f32[8,16], index: 1, kind: input, shape index: {}]   ;;  %s1135_s2 = inlined_call_operand.vmem [shape: f32[2,8,1155], index: 2, kind: output, shape index: {0}]   ;;  %s1136_s3 = inlined_call_operand.vmem [shape: f32[2,8,2], index: 3, kind: output, shape index: {1}]  }
   0x1 LB: > { %s924_s13 = sadd.s32 4294967295, %s989_s12   ;;  %p928_p0 = scmp.ge.s32.totalorder %s989_s12, 1  ;;  %s989_s12 = sphi %s1015_s12, %s14_s12  }
   0x2   : > { %p140_p1 = scmp.lt.s32.totalorder %s989_s12, 3 }
   0x4   : > { %p141_p2 = pnand %p928_p0, %p140_p1 }
   0x5   : > { %p168_p3 = scmp.lt.s32.totalorder (!%p141_p2), %s924_s13, 1  ;;  %s991_s18 = smov (!%p141_p2), 93   ;;  %v994_v14 = vmov (!%p141_p2), 0.0   ;;  %vm312_vm0 = vcmask (!%p141_p2), 23556   ;;  %vm217_vm1 = vcmask (!%p141_p2), 752640   ;;  %vm283_vm2 = vcmask (!%p141_p2), 760832  }
   0x6   : > { %144 = sbr.rel (%p141_p2) target bundleno = 565 (0x235), region = 28  ;;  %s992_s19 = smov (!%p141_p2), 92   ;;  %498 = vmatprep.mubr.f32.mxu0 (!%p141_p2), %v994_v14  ;;  %569 = vmatprep.mubr.f32.mxu1 (!%p141_p2), %v994_v14  ;;  %vm349_vm3 = vcmask (!%p141_p2), 1039360   ;;  %v1076_v49 = vld [vmem:[%s1134_s1] sm:$0xff] (!%p141_p2)  ;;  %vm430_vm4 = vcmask (!%p141_p2), 130048   ;;  %vm246_vm5 = vcmask (!%p141_p2), 19456  }
   0x7   : > { %s993_s20 = smov (!%p141_p2), 127   ;;  %vm798_vm6 = vcmask (!%p141_p2), 23552   ;;  %vm812_vm7 = vcmask (!%p141_p2), 7168   ;;  %vm836_vm8 = vcmask (!%p141_p2), 15368  }
   0xd   : > { %s1138_s13 = smov (!%p168_p3, %s924_s13), 1 }
   0xe   : > { %s959_s14 = smul.u32 40, %s1138_s13  ;;  %s931_s27 = sshll.u32 %s1138_s13, 3 }
   0xf   : > { %s960_s23 = smul.u32 80, %s1138_s13  ;;  %s181_s30 = scalar_lea.vmem %s1136_s3, %s931_s27 }
  0x10   : > { %s172_s17 = scalar_lea.vmem %s1133_s0, %s959_s14 }
  0x11   : > { %v248_v0 = vld [vmem:[%s172_s17] sm:$0xff]  ;;  %v183_v1 = vld [vmem:[%s172_s17 + $0x8] sm:$0xff]  ;;  %v184_v2 = vld [vmem:[%s172_s17 + $0x10] sm:$0xff]  ;;  %s1114_s26 = scalar_lea.vmem %s1135_s2, %s960_s23 }
  0x12   : > { %265 = vrot.lane.b32.xlu1 %v248_v0, %s991_s18  ;;  %v258_v3 = vcombine.low %v248_v0, %v248_v0  ;;  %201 = vrot.lane.b32.xlu0 %v183_v1, %s992_s19  ;;  %v192_v4 = vcombine.high %v248_v0, %v248_v0  ;;  %v185_v5 = vld [vmem:[%s172_s17 + $0x18] sm:$0xff]  ;;  %400 = vst [vmem:[#allocation2 + $0x58] sm:$0xf0] %v248_v0  ;;  %402 = vst [vmem:[#allocation2 + $0x68] sm:$0xf0] %v183_v1  ;;  %v186_v8 = vld [vmem:[%s172_s17 + $0x20] sm:$0xff] }
  0x13   : > { %404 = vst [vmem:[#allocation2 + $0x78] sm:$0xf0] %v184_v2  ;;  %v259_v6 = vcombine.low %v183_v1, %v183_v1  ;;  %v260_v7 = vcombine.low %v184_v2, %v184_v2  ;;  %406 = vst [vmem:[#allocation2 + $0x88] sm:$0xf0] %v185_v5  ;;  %v261_v9 = vcombine.low %v185_v5, %v185_v5 }
  0x14   : > { %v262_v10 = vcombine.low %v186_v8, %v186_v8  ;;  %399 = vst [vmem:[#allocation2 + $0x50] sm:$0xf0] %v258_v3  ;;  %v193_v11 = vcombine.high %v183_v1, %v183_v1  ;;  %v194_v12 = vcombine.high %v184_v2, %v184_v2  ;;  %v195_v13 = vcombine.high %v185_v5, %v185_v5 }
  0x15   : > { %401 = vst [vmem:[#allocation2 + $0x60] sm:$0xf0] %v259_v6  ;;  %403 = vst [vmem:[#allocation2 + $0x70] sm:$0xf0] %v260_v7  ;;  %v196_v15 = vcombine.high %v186_v8, %v186_v8 }
  0x16   : > { %333 = vrot.lane.b32.xlu1 %v183_v1, %s993_s20  ;;  %199 = vrot.lane.b32.xlu0 %v192_v4, %s992_s19  ;;  %407 = vst [vmem:[#allocation2 + $0x90] sm:$0xf0] %v262_v10  ;;  %405 = vst [vmem:[#allocation2 + $0x80] sm:$0xf0] %v261_v9 }
  0x17   : > { %408 = vst.msk [vmem:[#allocation2 + $0x98] sm:$0xf0] %vm312_vm0, %v186_v8 }
  0x1a   : > { %267 = vrot.lane.b32.xlu1 %v259_v6, %s991_s18  ;;  %331 = vrot.lane.b32.xlu0 %v192_v4, %s993_s20 }
  0x1e   : > { %263 = vrot.lane.b32.xlu1 %v258_v3, %s991_s18  ;;  %197 = vrot.lane.b32.xlu0 %v248_v0, %s992_s19 }
  0x22   : > { %203 = vrot.lane.b32.xlu1 %v193_v11, %s992_s19  ;;  %329 = vrot.lane.b32.xlu0 %v248_v0, %s993_s20 }
  0x26   : > { %269 = vrot.lane.b32.xlu1 %v183_v1, %s991_s18  ;;  %205 = vrot.lane.b32.xlu0 %v184_v2, %s992_s19 }
  0x2a   : > { %335 = vrot.lane.b32.xlu1 %v193_v11, %s993_s20  ;;  %271 = vrot.lane.b32.xlu0 %v260_v7, %s991_s18 }
  0x2e   : > { %207 = vrot.lane.b32.xlu1 %v194_v12, %s992_s19  ;;  %337 = vrot.lane.b32.xlu0 %v184_v2, %s993_s20 }
  0x32   : > { %273 = vrot.lane.b32.xlu1 %v184_v2, %s991_s18  ;;  %209 = vrot.lane.b32.xlu0 %v185_v5, %s992_s19 }
  0x36   : > { %339 = vrot.lane.b32.xlu1 %v194_v12, %s993_s20  ;;  %275 = vrot.lane.b32.xlu0 %v261_v9, %s991_s18 }
  0x3a   : > { %211 = vrot.lane.b32.xlu1 %v195_v13, %s992_s19  ;;  %341 = vrot.lane.b32.xlu0 %v185_v5, %s993_s20 }
  0x3e   : > { %277 = vrot.lane.b32.xlu1 %v185_v5, %s991_s18  ;;  %213 = vrot.lane.b32.xlu0 %v186_v8, %s992_s19 }
  0x42   : > { %343 = vrot.lane.b32.xlu1 %v195_v13, %s993_s20  ;;  %279 = vrot.lane.b32.xlu0 %v262_v10, %s991_s18 }
  0x46   : > { %215 = vrot.lane.b32.xlu1 %v196_v15, %s992_s19  ;;  %345 = vrot.lane.b32.xlu0 %v186_v8, %s993_s20 }
  0x4a   : > { %347 = vrot.lane.b32.xlu1 %v196_v15, %s993_s20  ;;  %281 = vrot.lane.b32.xlu0 %v186_v8, %s991_s18 }
  0x84   : > { %v266_v16 = vpop.permute.xlu1 %265  ;;  %v202_v17 = vpop.permute.xlu0 %201 }
  0x88   : > { %v334_v18 = vpop.permute.xlu1 %333  ;;  %v200_v19 = vpop.permute.xlu0 %199 }
  0x89   : > { %v219_v20 = vsel %vm217_vm1, %v200_v19, %v202_v17 }
  0x8a   : > { %238 = vst [vmem:[#allocation2 + $0x8] sm:$0xf] %v219_v20 }
  0x8c   : > { %v268_v21 = vpop.permute.xlu1 %267  ;;  %v332_v22 = vpop.permute.xlu0 %331 }
  0x8d   : > { %v285_v23 = vsel %vm283_vm2, %v266_v16, %v268_v21  ;;  %v351_v24 = vsel %vm349_vm3, %v332_v22, %v334_v18 }
  0x8e   : > { %304 = vst [vmem:[#allocation2 + $0x8] sm:$0xf0] %v285_v23  ;;  %370 = vst [vmem:[#allocation2 + $0x58] sm:$0xf] %v351_v24 }
  0x90   : > { %v264_v25 = vpop.permute.xlu1 %263  ;;  %v198_v26 = vpop.permute.xlu0 %197 }
  0x91   : > { %v284_v27 = vsel %vm283_vm2, %v264_v25, %v266_v16  ;;  %v218_v28 = vsel %vm217_vm1, %v198_v26, %v200_v19 }
  0x92   : > { %303 = vst [vmem:[#allocation2] sm:$0xf0] %v284_v27  ;;  %237 = vst [vmem:[#allocation2] sm:$0xf] %v218_v28 }
  0x94   : > { %v204_v29 = vpop.permute.xlu1 %203  ;;  %v330_v30 = vpop.permute.xlu0 %329 }
  0x95   : > { %v220_v31 = vsel %vm217_vm1, %v202_v17, %v204_v29  ;;  %v350_v32 = vsel %vm349_vm3, %v330_v30, %v332_v22  ;;  %v411_v33 = vld [vmem:[#allocation2 + $0x8] sm:$0xff]  ;;  %v421_v34 = vld [vmem:[#allocation2 + $0x58] sm:$0xff] }
  0x96   : > { %239 = vst [vmem:[#allocation2 + $0x10] sm:$0xf] %v220_v31  ;;  %369 = vst [vmem:[#allocation2 + $0x50] sm:$0xf] %v350_v32  ;;  %v939_v35 = vpack.c.bf16 %v421_v34, %v411_v33 }
  0x98   : > { %v270_v36 = vpop.permute.xlu1 %269  ;;  %940 = vmatprep.subr.bf16.mxu0 %v939_v35  ;;  %v206_v37 = vpop.permute.xlu0 %205 }
  0x99   : > { %v286_v38 = vsel %vm283_vm2, %v268_v21, %v270_v36  ;;  %v221_v39 = vsel %vm217_vm1, %v204_v29, %v206_v37  ;;  %v410_v44 = vld [vmem:[#allocation2] sm:$0xff] }
  0x9a   : > { %305 = vst [vmem:[#allocation2 + $0x10] sm:$0xf0] %v286_v38  ;;  %240 = vst [vmem:[#allocation2 + $0x18] sm:$0xf] %v221_v39 }
  0x9c   : > { %v336_v40 = vpop.permute.xlu1 %335  ;;  %v272_v41 = vpop.permute.xlu0 %271 }
  0x9d   : > { %v352_v42 = vsel %vm349_vm3, %v334_v18, %v336_v40  ;;  %v287_v43 = vsel %vm283_vm2, %v270_v36, %v272_v41  ;;  %v420_v45 = vld [vmem:[#allocation2 + $0x50] sm:$0xff] }
  0x9e   : > { %371 = vst [vmem:[#allocation2 + $0x60] sm:$0xf] %v352_v42  ;;  %306 = vst [vmem:[#allocation2 + $0x18] sm:$0xf0] %v287_v43  ;;  %v941_v46 = vpack.c.bf16 %v420_v45, %v410_v44 }
  0xa0   : > { %v208_v47 = vpop.permute.xlu1 %207  ;;  %942 = vmatpush1.bf16.msra.mxu0 %v941_v46  ;;  %v338_v48 = vpop.permute.xlu0 %337 }
  0xa1   : > { %v222_v50 = vsel %vm217_vm1, %v206_v37, %v208_v47  ;;  %v353_v51 = vsel %vm349_vm3, %v336_v40, %v338_v48  ;;  %v412_v0 = vld [vmem:[#allocation2 + $0x10] sm:$0xff] }
  0xa2   : > { %241 = vst [vmem:[#allocation2 + $0x20] sm:$0xf] %v222_v50  ;;  %372 = vst [vmem:[#allocation2 + $0x68] sm:$0xf] %v353_v51 }
  0xa3   : > { %932 = vmatmul.mubr.msk.f32.vlgmr.msra.gmra.mrb[0].mxu0 %vm430_vm4, %v1076_v49 }
  0xa4   : > { %v274_v52 = vpop.permute.xlu1 %273  ;;  %v210_v53 = vpop.permute.xlu0 %209  ;;  %640 = vmatprep.mubr.f32.mxu0 %v994_v14 }
  0xa5   : > { %v288_v54 = vsel %vm283_vm2, %v272_v41, %v274_v52  ;;  %v223_v55 = vsel %vm217_vm1, %v208_v47, %v210_v53  ;;  %v422_v58 = vld [vmem:[#allocation2 + $0x60] sm:$0xff]  ;;  %v413_v61 = vld [vmem:[#allocation2 + $0x18] sm:$0xff] }
  0xa6   : > { %307 = vst [vmem:[#allocation2 + $0x20] sm:$0xf0] %v288_v54  ;;  %242 = vst [vmem:[#allocation2 + $0x28] sm:$0xf] %v223_v55  ;;  %v945_v1 = vpack.c.bf16 %v422_v58, %v412_v0 }
  0xa8   : > { %v340_v56 = vpop.permute.xlu1 %339  ;;  %v276_v57 = vpop.permute.xlu0 %275 }
  0xa9   : > { %v354_v59 = vsel %vm349_vm3, %v338_v48, %v340_v56  ;;  %v289_v60 = vsel %vm283_vm2, %v274_v52, %v276_v57  ;;  %v423_v62 = vld [vmem:[#allocation2 + $0x68] sm:$0xff] }
  0xaa   : > { %373 = vst [vmem:[#allocation2 + $0x70] sm:$0xf] %v354_v59  ;;  %308 = vst [vmem:[#allocation2 + $0x28] sm:$0xf0] %v289_v60  ;;  %v943_v63 = vpack.c.bf16 %v423_v62, %v413_v61 }
  0xac   : > { %v212_v2 = vpop.permute.xlu1 %211  ;;  %944 = vmatprep.subr.bf16.mxu1 %v943_v63  ;;  %v342_v3 = vpop.permute.xlu0 %341 }
  0xad   : > { %v224_v4 = vsel %vm217_vm1, %v210_v53, %v212_v2  ;;  %v355_v5 = vsel %vm349_vm3, %v340_v56, %v342_v3  ;;  %946 = vmatpush1.bf16.msra.mxu1 %v945_v1  ;;  %v414_v19 = vld [vmem:[#allocation2 + $0x20] sm:$0xff] }
  0xae   : > { %243 = vst [vmem:[#allocation2 + $0x30] sm:$0xf] %v224_v4  ;;  %374 = vst [vmem:[#allocation2 + $0x78] sm:$0xf] %v355_v5 }
  0xb0   : > { %v278_v6 = vpop.permute.xlu1 %277  ;;  %v214_v7 = vpop.permute.xlu0 %213  ;;  %933 = vmatmul.mubr.msk.f32.vlgmr.msra.gmra.mrb[0].mxu1 %vm430_vm4, %v1076_v49 }
  0xb1   : > { %v290_v8 = vsel %vm283_vm2, %v276_v57, %v278_v6  ;;  %v225_v9 = vsel %vm217_vm1, %v212_v2, %v214_v7  ;;  %711 = vmatprep.mubr.f32.mxu1 %v994_v14  ;;  %v424_v12 = vld [vmem:[#allocation2 + $0x70] sm:$0xff]  ;;  %v415_v16 = vld [vmem:[#allocation2 + $0x28] sm:$0xff] }
  0xb2   : > { %309 = vst [vmem:[#allocation2 + $0x30] sm:$0xf0] %v290_v8  ;;  %244 = vst [vmem:[#allocation2 + $0x38] sm:$0xf] %v225_v9  ;;  %v949_v20 = vpack.c.bf16 %v424_v12, %v414_v19 }
  0xb4   : > { %v344_v10 = vpop.permute.xlu1 %343  ;;  %v280_v11 = vpop.permute.xlu0 %279 }
  0xb5   : > { %v356_v13 = vsel %vm349_vm3, %v342_v3, %v344_v10  ;;  %v291_v15 = vsel %vm283_vm2, %v278_v6, %v280_v11  ;;  %v425_v17 = vld [vmem:[#allocation2 + $0x78] sm:$0xff] }
  0xb6   : > { %375 = vst [vmem:[#allocation2 + $0x80] sm:$0xf] %v356_v13  ;;  %310 = vst [vmem:[#allocation2 + $0x38] sm:$0xf0] %v291_v15  ;;  %v947_v18 = vpack.c.bf16 %v425_v17, %v415_v16 }
  0xb8   : > { %v216_v21 = vpop.permute.xlu1 %215  ;;  %948 = vmatprep.subr.bf16.mxu0 %v947_v18  ;;  %v346_v22 = vpop.permute.xlu0 %345 }
  0xb9   : > { %v226_v23 = vsel %vm217_vm1, %v214_v7, %v216_v21  ;;  %247 = vst.msk [vmem:[#allocation2 + $0x48] sm:$0xf] %vm246_vm5, %v216_v21  ;;  %v357_v24 = vsel %vm349_vm3, %v344_v10, %v346_v22  ;;  %950 = vmatpush1.bf16.msra.mxu0 %v949_v20  ;;  %v416_v33 = vld [vmem:[#allocation2 + $0x30] sm:$0xff] }
  0xba   : > { %245 = vst [vmem:[#allocation2 + $0x40] sm:$0xf] %v226_v23  ;;  %376 = vst [vmem:[#allocation2 + $0x88] sm:$0xf] %v357_v24 }
  0xbc   : > { %v348_v25 = vpop.permute.xlu1 %347  ;;  %v282_v26 = vpop.permute.xlu0 %281  ;;  %934 = vmatmul.mubr.msk.f32.vlgmr.msra.gmra.mrb[2].mxu0 %vm430_vm4, %v1076_v49 }
  0xbd   : > { %v358_v27 = vsel %vm349_vm3, %v346_v22, %v348_v25  ;;  %378 = vst.msk [vmem:[#allocation2 + $0x98] sm:$0xf] %vm246_vm5, %v348_v25  ;;  %v292_v28 = vsel %vm283_vm2, %v280_v11, %v282_v26  ;;  %782 = vmatprep.mubr.f32.mxu0 %v994_v14  ;;  %v426_v29 = vld [vmem:[#allocation2 + $0x80] sm:$0xff]  ;;  %v417_v30 = vld [vmem:[#allocation2 + $0x38] sm:$0xff] }
  0xbe   : > { %313 = vst.msk [vmem:[#allocation2 + $0x48] sm:$0xf0] %vm312_vm0, %v282_v26  ;;  %377 = vst [vmem:[#allocation2 + $0x90] sm:$0xf] %v358_v27  ;;  %v953_v34 = vpack.c.bf16 %v426_v29, %v416_v33 }
  0xbf   : > { %311 = vst [vmem:[#allocation2 + $0x40] sm:$0xf0] %v292_v28 }
  0xc1   : > { %v427_v31 = vld [vmem:[#allocation2 + $0x88] sm:$0xff] }
  0xc2   : > { %v951_v32 = vpack.c.bf16 %v427_v31, %v417_v30 }
  0xc4   : > { %952 = vmatprep.subr.bf16.mxu1 %v951_v32  ;;  %v429_v36 = vld [vmem:[#allocation2 + $0x98] sm:$0xff] }
  0xc5   : > { %v419_v35 = vld [vmem:[#allocation2 + $0x48] sm:$0xff]  ;;  %954 = vmatpush1.bf16.msra.mxu1 %v953_v34  ;;  %v428_v39 = vld [vmem:[#allocation2 + $0x90] sm:$0xff] }
  0xc6   : > { %v955_v37 = vpack.c.bf16 %v429_v36, %v419_v35  ;;  %v418_v38 = vld [vmem:[#allocation2 + $0x40] sm:$0xff] }
  0xc7   : > { %v957_v40 = vpack.c.bf16 %v428_v39, %v418_v38 }
  0xc8   : > { %956 = vmatprep.subr.bf16.mxu0 %v955_v37  ;;  %935 = vmatmul.mubr.msk.f32.vlgmr.msra.gmra.mrb[2].mxu1 %vm430_vm4, %v1076_v49 }
  0xc9   : > { %958 = vmatpush1.bf16.msra.mxu0 %v957_v40 }
  0xcc   : > { %936 = vmatmul.mubr.msk.f32.vlgmr.msra.gmra.mrb[4].mxu0 %vm430_vm4, %v1076_v49 }
 0x176   : > { %v500_v14 = vpop.f32.mrb[0].mxu0 }
 0x177   : > { %789 = vst [vmem:[%s1114_s26] sm:$0xff] %v500_v14  ;;  %v814_v41 = vmul.f32 %v500_v14, %v500_v14  ;;  %v502_v42 = vpop.f32.mrb[1].mxu0 }
 0x178   : > { %790 = vst [vmem:[%s1114_s26 + $0x8] sm:$0xff] %v502_v42  ;;  %v800_v43 = vadd.f32 %v502_v42, %v500_v14  ;;  %v815_v44 = vmul.f32 %v502_v42, %v502_v42 }
 0x17a   : > { %v824_v45 = vadd.f32 %v815_v44, %v814_v41 }
 0x183   : > { %v571_v46 = vpop.f32.mrb[0].mxu1 }
 0x184   : > { %791 = vst [vmem:[%s1114_s26 + $0x10] sm:$0xff] %v571_v46  ;;  %v801_v47 = vadd.f32 %v800_v43, %v571_v46  ;;  %v816_v48 = vmul.f32 %v571_v46, %v571_v46  ;;  %v573_v49 = vpop.f32.mrb[1].mxu1 }
 0x185   : > { %792 = vst [vmem:[%s1114_s26 + $0x18] sm:$0xff] %v573_v49  ;;  %v817_v50 = vmul.f32 %v573_v49, %v573_v49 }
 0x186   : > { %v825_v51 = vadd.f32 %v824_v45, %v816_v48  ;;  %v802_v52 = vadd.f32 %v801_v47, %v573_v49 }
 0x188   : > { %v826_v53 = vadd.f32 %v825_v51, %v817_v50 }
 0x18f   : > { %v642_v54 = vpop.f32.mrb[2].mxu0 }
 0x190   : > { %793 = vst [vmem:[%s1114_s26 + $0x20] sm:$0xff] %v642_v54  ;;  %v803_v55 = vadd.f32 %v802_v52, %v642_v54  ;;  %v818_v56 = vmul.f32 %v642_v54, %v642_v54  ;;  %v644_v57 = vpop.f32.mrb[3].mxu0 }
 0x191   : > { %794 = vst [vmem:[%s1114_s26 + $0x28] sm:$0xff] %v644_v57  ;;  %v819_v58 = vmul.f32 %v644_v57, %v644_v57 }
 0x192   : > { %v827_v59 = vadd.f32 %v826_v53, %v818_v56  ;;  %v804_v60 = vadd.f32 %v803_v55, %v644_v57 }
 0x194   : > { %v828_v61 = vadd.f32 %v827_v59, %v819_v58 }
 0x19b   : > { %v713_v62 = vpop.f32.mrb[2].mxu1 }
 0x19c   : > { %795 = vst [vmem:[%s1114_s26 + $0x30] sm:$0xff] %v713_v62  ;;  %v805_v63 = vadd.f32 %v804_v60, %v713_v62  ;;  %v820_v0 = vmul.f32 %v713_v62, %v713_v62  ;;  %v715_v1 = vpop.f32.mrb[3].mxu1 }
 0x19d   : > { %796 = vst [vmem:[%s1114_s26 + $0x38] sm:$0xff] %v715_v1  ;;  %v821_v2 = vmul.f32 %v715_v1, %v715_v1 }
 0x19e   : > { %v829_v3 = vadd.f32 %v828_v61, %v820_v0  ;;  %v806_v4 = vadd.f32 %v805_v63, %v715_v1 }
 0x19f   : > { %v784_v5 = vpop.f32.mrb[4].mxu0 }
 0x1a0   : > { %797 = vst [vmem:[%s1114_s26 + $0x40] sm:$0xff] %v784_v5  ;;  %v822_v6 = vmul.f32 %v784_v5, %v784_v5  ;;  %v786_v7 = vpop.f32.mrb[5].mxu0  ;;  %v830_v8 = vadd.f32 %v829_v3, %v821_v2  ;;  %v807_v11 = vadd.f32 %v806_v4, %v784_v5 }
 0x1a1   : > { %799 = vst.msk [vmem:[%s1114_s26 + $0x48] sm:$0xff] %vm798_vm6, %v786_v7  ;;  %v808_v9 = vsel %vm798_vm6, %v786_v7, 0.0  ;;  %v823_v10 = vmul.f32 %v786_v7, %v786_v7 }
 0x1a2   : > { %v809_v12 = vadd.f32 %v808_v9, %v807_v11  ;;  %v831_v13 = vadd.f32 %v830_v8, %v822_v6 }
 0x1a3   : > { %v832_v15 = vsel %vm798_vm6, %v823_v10, 0.0 }
 0x1a4   : > { %810 = vadd.xlane.f32.xlu0 %v809_v12  ;;  %v833_v16 = vadd.f32 %v832_v15, %v831_v13 }
 0x1a6   : > { %834 = vadd.xlane.f32.xlu1 %v833_v16 }
 0x231   : > { %v811_v17 = vpop.xlane.xlu0 %810 }
 0x232   : > { %813 = vst.msk [vmem:[%s181_s30] sm:$0xff] %vm812_vm7, %v811_v17 }
 0x233   : > { %v835_v18 = vpop.xlane.xlu1 %834 }
 0x234   : > { %837 = vst.msk [vmem:[%s181_s30] sm:$0xff] %vm836_vm8, %v835_v18 }
 0x235 PF: > { %s14_s12 = sadd.s32 1, %s989_s12  }
 0x236   : > { %p11_p4 = scmp.ge.s32.totalorder %s14_s12, 4  }
 0x238   :  { %13 = sbr.rel (!%p11_p4) target bundleno = 1 (0x1), region = 70 }

// kernel: up_conv.3
= control target key start
LH: loop header
LB: loop body
LE: loop exit
PB: predicated region body
PF: predicated region fallthrough
CT: control target
= control target key end

     0   :  { %s705_s12 = smov 0   ;;  %s707_s13 = smov 0   ;;  %s920_s0 = inlined_call_operand.vmem [shape: f32[2,8,33,35], index: 0, kind: input, shape index: {}]   ;;  %s921_s1 = inlined_call_operand.vmem [shape: f32[8,1,33], index: 1, kind: input, shape index: {}]   ;;  %s922_s2 = inlined_call_operand.vmem [shape: f32[8,1,33], index: 2, kind: input, shape index: {}]   ;;  %s923_s3 = inlined_call_operand.vmem [shape: f32[2,8,33,33], index: 3, kind: output, shape index: {}]  }
   0x1   :  { %s709_s14 = smov 0  }
   0x2 LB: > { %s25_s15 = sadd.s32 1, %s679_s13  ;;  %p615_p0 = scmp.ge.s32.totalorder %s683_s14, 1  ;;  %s683_s14 = sphi %s709_s14, %s13_s14   ;;  %s679_s13 = sphi %s707_s13, %s925_s13   ;;  %s675_s12 = sphi %s705_s12, %s924_s12  }
   0x3   : > { %p27_p1 = scmp.ge.s32.totalorder %s25_s15, 2  ;;  %p158_p2 = scmp.lt.s32.totalorder %s683_s14, 3 }
   0x5   : > { %s927_s15 = smov (%p27_p1, %s25_s15), 0  ;;  %p159_p3 = pnand %p615_p0, %p158_p2 }
   0x6   : > { %p191_p4 = scmp.lt.s32.totalorder (!%p159_p3), %s675_s12, 1  ;;  %v618_v0 = vld [vmem:[%s921_s1] ss:$0 sm:$0xff] (!%p159_p3)  ;;  %v619_v2 = vld [vmem:[%s921_s1 + $0x1] ss:$0 sm:$0xff] (!%p159_p3)  ;;  %vm482_vm0 = vcmask (!%p159_p3), 269312  }
   0x7   : > { %162 = sbr.rel (%p159_p3) target bundleno = 55 (0x37), region = 32  ;;  %v626_v1 = vld [vmem:[%s922_s2] ss:$0 sm:$0xff] (!%p159_p3)  ;;  %v627_v3 = vld [vmem:[%s922_s2 + $0x1] ss:$0 sm:$0xff] (!%p159_p3)  ;;  %vm487_vm1 = vcmask (!%p159_p3), 262144  }
   0x8   : > { %v620_v22 = vld [vmem:[%s921_s1 + $0x2] ss:$0 sm:$0xff] (!%p159_p3)  ;;  %v621_v48 = vld [vmem:[%s921_s1 + $0x3] ss:$0 sm:$0xff] (!%p159_p3)  ;;  %v794_v59 = vld [vmem:[%s921_s1 + $0x4] ss:$0 sm:$0xff] (!%p159_p3) }
   0x9   : > { %v628_v30 = vld [vmem:[%s922_s2 + $0x2] ss:$0 sm:$0xff] (!%p159_p3)  ;;  %v629_v57 = vld [vmem:[%s922_s2 + $0x3] ss:$0 sm:$0xff] (!%p159_p3) }
   0xe   : > { %s929_s12 = smov (!%p191_p4, %s675_s12), 1 }
   0xf   : > { %s636_s16 = smul.u32 320, %s929_s12 }
  0x11   : > { %s732_s21 = scalar_lea.vmem %s920_s0, %s636_s16  ;;  %s757_s5 = scalar_lea.vmem %s923_s3, %s636_s16 }
  0x12   : > { %v210_v4 = vld [vmem:[%s732_s21] sm:$0xff]  ;;  %v211_v5 = vld [vmem:[%s732_s21 + $0x8] sm:$0xff]  ;;  %v212_v6 = vld [vmem:[%s732_s21 + $0x10] sm:$0xff] }
  0x13   : > { %v306_v7 = vmul.f32 %v618_v0, %v210_v4  ;;  %v307_v8 = vmul.f32 %v618_v0, %v211_v5  ;;  %v308_v9 = vmul.f32 %v618_v0, %v212_v6  ;;  %v213_v10 = vld [vmem:[%s732_s21 + $0x18] sm:$0xff]  ;;  %v214_v11 = vld [vmem:[%s732_s21 + $0x20] sm:$0x1]  ;;  %v215_v12 = vld [vmem:[%s732_s21 + $0x28] sm:$0xff] }
  0x14   : > { %v309_v13 = vmul.f32 %v618_v0, %v213_v10  ;;  %v310_v14 = vmul.f32 %v618_v0, %v214_v11  ;;  %v311_v15 = vmul.f32 %v619_v2, %v215_v12  ;;  %v216_v16 = vld [vmem:[%s732_s21 + $0x30] sm:$0xff]  ;;  %v217_v17 = vld [vmem:[%s732_s21 + $0x38] sm:$0xff]  ;;  %v218_v27 = vld [vmem:[%s732_s21 + $0x40] sm:$0xff] }
  0x15   : > { %v402_v18 = vadd.f32 %v626_v1, %v306_v7  ;;  %v403_v19 = vadd.f32 %v626_v1, %v307_v8  ;;  %v404_v20 = vadd.f32 %v626_v1, %v308_v9  ;;  %v312_v21 = vmul.f32 %v619_v2, %v216_v16  ;;  %v219_v28 = vld [vmem:[%s732_s21 + $0x48] sm:$0x1]  ;;  %v220_v29 = vld [vmem:[%s732_s21 + $0x50] sm:$0xff]  ;;  %v221_v35 = vld [vmem:[%s732_s21 + $0x58] sm:$0xff] }
  0x16   : > { %v405_v23 = vadd.f32 %v626_v1, %v309_v13  ;;  %v406_v24 = vadd.f32 %v626_v1, %v310_v14  ;;  %v407_v25 = vadd.f32 %v627_v3, %v311_v15  ;;  %v313_v26 = vmul.f32 %v619_v2, %v217_v17  ;;  %v222_v36 = vld [vmem:[%s732_s21 + $0x60] sm:$0xff]  ;;  %v223_v37 = vld [vmem:[%s732_s21 + $0x68] sm:$0xff]  ;;  %v224_v42 = vld [vmem:[%s732_s21 + $0x70] sm:$0x1] }
  0x17   : > { %v442_v31 = vmax.f32 %v402_v18, 0.0  ;;  %v443_v32 = vmax.f32 %v403_v19, 0.0  ;;  %v444_v33 = vmax.f32 %v404_v20, 0.0  ;;  %v408_v34 = vadd.f32 %v627_v3, %v312_v21  ;;  %v225_v47 = vld [vmem:[%s732_s21 + $0x78] sm:$0xff]  ;;  %v226_v58 = vld [vmem:[%s732_s21 + $0x80] sm:$0xff]  ;;  %v227_v0 = vld [vmem:[%s732_s21 + $0x88] sm:$0xff] }
  0x18   : > { %v445_v38 = vmax.f32 %v405_v23, 0.0  ;;  %v446_v39 = vmax.f32 %v406_v24, 0.0  ;;  %v447_v40 = vmax.f32 %v407_v25, 0.0  ;;  %v409_v41 = vadd.f32 %v627_v3, %v313_v26  ;;  %v228_v1 = vld [vmem:[%s732_s21 + $0x90] sm:$0xff]  ;;  %v230_v7 = vld [vmem:[%s732_s21 + $0xa0] sm:$0xff]  ;;  %v231_v8 = vld [vmem:[%s732_s21 + $0xa8] sm:$0xff] }
  0x19   : > { %483 = vst.msk [vmem:[%s757_s5] sm:$0xff] %vm482_vm0, %v442_v31  ;;  %484 = vst.msk [vmem:[%s757_s5 + $0x8] sm:$0xff] %vm482_vm0, %v443_v32  ;;  %v448_v43 = vmax.f32 %v408_v34, 0.0  ;;  %v314_v44 = vmul.f32 %v619_v2, %v218_v27  ;;  %v315_v45 = vmul.f32 %v619_v2, %v219_v28  ;;  %v316_v46 = vmul.f32 %v620_v22, %v220_v29  ;;  %v229_v2 = vld [vmem:[%s732_s21 + $0x98] sm:$0x1]  ;;  %v232_v13 = vld [vmem:[%s732_s21 + $0xb0] sm:$0xff] }
  0x1a   : > { %485 = vst.msk [vmem:[%s757_s5 + $0x10] sm:$0xff] %vm482_vm0, %v444_v33  ;;  %486 = vst.msk [vmem:[%s757_s5 + $0x18] sm:$0xff] %vm482_vm0, %v445_v38  ;;  %v449_v49 = vmax.f32 %v409_v41, 0.0  ;;  %v317_v50 = vmul.f32 %v620_v22, %v221_v35  ;;  %v318_v51 = vmul.f32 %v620_v22, %v222_v36  ;;  %v319_v52 = vmul.f32 %v620_v22, %v223_v37  ;;  %v630_v18 = vld [vmem:[%s922_s2 + $0x4] ss:$0 sm:$0xff]  ;;  %v233_v19 = vld [vmem:[%s732_s21 + $0xb8] sm:$0xff] }
  0x1b   : > { %488 = vst.msk [vmem:[%s757_s5 + $0x20] sm:$0x1] %vm487_vm1, %v446_v39  ;;  %v410_v53 = vadd.f32 %v627_v3, %v314_v44  ;;  %v411_v54 = vadd.f32 %v627_v3, %v315_v45  ;;  %v412_v55 = vadd.f32 %v628_v30, %v316_v46  ;;  %v320_v56 = vmul.f32 %v620_v22, %v224_v42  ;;  %v234_v28 = vld [vmem:[%s732_s21 + $0xc0] sm:$0x1]  ;;  %v623_v29 = vld [vmem:[%s921_s1 + $0x5] ss:$0 sm:$0xff] }
  0x1c   : > { %489 = vst.msk [vmem:[%s757_s5 + $0x28] sm:$0xff] %vm482_vm0, %v447_v40  ;;  %490 = vst.msk [vmem:[%s757_s5 + $0x30] sm:$0xff] %vm482_vm0, %v448_v43  ;;  %v413_v60 = vadd.f32 %v628_v30, %v317_v50  ;;  %v414_v61 = vadd.f32 %v628_v30, %v318_v51  ;;  %v415_v62 = vadd.f32 %v628_v30, %v319_v52  ;;  %v235_v34 = vld [vmem:[%s732_s21 + $0xc8] sm:$0xff]  ;;  %v631_v35 = vld [vmem:[%s922_s2 + $0x5] ss:$0 sm:$0xff] }
  0x1d   : > { %491 = vst.msk [vmem:[%s757_s5 + $0x38] sm:$0xff] %vm482_vm0, %v449_v49  ;;  %v321_v63 = vmul.f32 %v621_v48, %v225_v47  ;;  %v450_v3 = vmax.f32 %v410_v53, 0.0  ;;  %v451_v4 = vmax.f32 %v411_v54, 0.0  ;;  %v452_v5 = vmax.f32 %v412_v55, 0.0  ;;  %v236_v36 = vld [vmem:[%s732_s21 + $0xd0] sm:$0xff]  ;;  %v237_v37 = vld [vmem:[%s732_s21 + $0xd8] sm:$0xff] }
  0x1e   : > { %v416_v6 = vadd.f32 %v628_v30, %v320_v56  ;;  %v453_v9 = vmax.f32 %v413_v60, 0.0  ;;  %v454_v10 = vmax.f32 %v414_v61, 0.0  ;;  %v455_v11 = vmax.f32 %v415_v62, 0.0  ;;  %v238_v42 = vld [vmem:[%s732_s21 + $0xe0] sm:$0xff]  ;;  %v239_v43 = vld [vmem:[%s732_s21 + $0xe8] sm:$0x1] }
  0x1f   : > { %v417_v12 = vadd.f32 %v629_v57, %v321_v63  ;;  %492 = vst.msk [vmem:[%s757_s5 + $0x40] sm:$0xff] %vm482_vm0, %v450_v3  ;;  %494 = vst.msk [vmem:[%s757_s5 + $0x50] sm:$0xff] %vm482_vm0, %v452_v5  ;;  %v322_v15 = vmul.f32 %v621_v48, %v226_v58  ;;  %v323_v16 = vmul.f32 %v621_v48, %v227_v0  ;;  %v624_v49 = vld [vmem:[%s921_s1 + $0x6] ss:$0 sm:$0xff]  ;;  %v241_v54 = vld [vmem:[%s732_s21 + $0xf8] sm:$0xff] }
  0x20   : > { %493 = vst.msk [vmem:[%s757_s5 + $0x48] sm:$0x1] %vm487_vm1, %v451_v4  ;;  %v456_v14 = vmax.f32 %v416_v6, 0.0  ;;  %v324_v17 = vmul.f32 %v621_v48, %v228_v1  ;;  %v325_v21 = vmul.f32 %v621_v48, %v229_v2  ;;  %v326_v22 = vmul.f32 %v794_v59, %v230_v7  ;;  %v240_v48 = vld [vmem:[%s732_s21 + $0xf0] sm:$0xff]  ;;  %v625_v0 = vld [vmem:[%s921_s1 + $0x7] ss:$0 sm:$0xff] }
  0x21   : > { %495 = vst.msk [vmem:[%s757_s5 + $0x58] sm:$0xff] %vm482_vm0, %v453_v9  ;;  %496 = vst.msk [vmem:[%s757_s5 + $0x60] sm:$0xff] %vm482_vm0, %v454_v10  ;;  %v457_v20 = vmax.f32 %v417_v12, 0.0  ;;  %v327_v23 = vmul.f32 %v794_v59, %v231_v8  ;;  %v418_v24 = vadd.f32 %v629_v57, %v322_v15  ;;  %v419_v25 = vadd.f32 %v629_v57, %v323_v16  ;;  %v242_v5 = vld [vmem:[%s732_s21 + $0x100] sm:$0xff]  ;;  %v243_v6 = vld [vmem:[%s732_s21 + $0x108] sm:$0xff] }
  0x22   : > { %497 = vst.msk [vmem:[%s757_s5 + $0x68] sm:$0xff] %vm482_vm0, %v455_v11  ;;  %v420_v26 = vadd.f32 %v629_v57, %v324_v17  ;;  %v328_v27 = vmul.f32 %v794_v59, %v232_v13  ;;  %v421_v30 = vadd.f32 %v629_v57, %v325_v21  ;;  %v422_v31 = vadd.f32 %v630_v18, %v326_v22  ;;  %v244_v7 = vld [vmem:[%s732_s21 + $0x110] sm:$0x1]  ;;  %v245_v12 = vld [vmem:[%s732_s21 + $0x118] sm:$0xff]  ;;  %v246_v13 = vld [vmem:[%s732_s21 + $0x120] sm:$0xff] }
  0x23   : > { %498 = vst.msk [vmem:[%s757_s5 + $0x70] sm:$0x1] %vm487_vm1, %v456_v14  ;;  %v423_v32 = vadd.f32 %v630_v18, %v327_v23  ;;  %v329_v33 = vmul.f32 %v794_v59, %v233_v19  ;;  %v458_v38 = vmax.f32 %v418_v24, 0.0  ;;  %v459_v39 = vmax.f32 %v419_v25, 0.0  ;;  %v247_v14 = vld [vmem:[%s732_s21 + $0x128] sm:$0xff]  ;;  %v248_v19 = vld [vmem:[%s732_s21 + $0x130] sm:$0xff] }
  0x24   : > { %499 = vst.msk [vmem:[%s757_s5 + $0x78] sm:$0xff] %vm482_vm0, %v457_v20  ;;  %v460_v40 = vmax.f32 %v420_v26, 0.0  ;;  %v424_v41 = vadd.f32 %v630_v18, %v328_v27  ;;  %v461_v44 = vmax.f32 %v421_v30, 0.0  ;;  %v462_v45 = vmax.f32 %v422_v31, 0.0  ;;  %v633_v24 = vld [vmem:[%s922_s2 + $0x7] ss:$0 sm:$0xff] }
  0x25   : > { %v463_v46 = vmax.f32 %v423_v32, 0.0  ;;  %v425_v47 = vadd.f32 %v630_v18, %v329_v33  ;;  %500 = vst.msk [vmem:[%s757_s5 + $0x80] sm:$0xff] %vm482_vm0, %v458_v38  ;;  %501 = vst.msk [vmem:[%s757_s5 + $0x88] sm:$0xff] %vm482_vm0, %v459_v39  ;;  %v330_v51 = vmul.f32 %v794_v59, %v234_v28  ;;  %v331_v52 = vmul.f32 %v623_v29, %v235_v34  ;;  %v632_v59 = vld [vmem:[%s922_s2 + $0x6] ss:$0 sm:$0xff] }
  0x26   : > { %502 = vst.msk [vmem:[%s757_s5 + $0x90] sm:$0xff] %vm482_vm0, %v460_v40  ;;  %v464_v50 = vmax.f32 %v424_v41, 0.0  ;;  %v332_v53 = vmul.f32 %v623_v29, %v236_v36  ;;  %504 = vst.msk [vmem:[%s757_s5 + $0xa0] sm:$0xff] %vm482_vm0, %v462_v45  ;;  %v333_v56 = vmul.f32 %v623_v29, %v237_v37  ;;  %v334_v57 = vmul.f32 %v623_v29, %v238_v42  ;;  %v249_v25 = vld [vmem:[%s732_s21 + $0x138] sm:$0x1] }
  0x27   : > { %503 = vst.msk [vmem:[%s757_s5 + $0x98] sm:$0x1] %vm487_vm1, %v461_v44  ;;  %v465_v55 = vmax.f32 %v425_v47, 0.0  ;;  %v335_v58 = vmul.f32 %v623_v29, %v239_v43  ;;  %v426_v60 = vadd.f32 %v630_v18, %v330_v51  ;;  %v427_v61 = vadd.f32 %v631_v35, %v331_v52 }
  0x28   : > { %505 = vst.msk [vmem:[%s757_s5 + $0xa8] sm:$0xff] %vm482_vm0, %v463_v46  ;;  %506 = vst.msk [vmem:[%s757_s5 + $0xb0] sm:$0xff] %vm482_vm0, %v464_v50  ;;  %v428_v62 = vadd.f32 %v631_v35, %v332_v53  ;;  %v336_v63 = vmul.f32 %v624_v49, %v240_v48  ;;  %v429_v1 = vadd.f32 %v631_v35, %v333_v56 }
  0x29   : > { %507 = vst.msk [vmem:[%s757_s5 + $0xb8] sm:$0xff] %vm482_vm0, %v465_v55  ;;  %v430_v2 = vadd.f32 %v631_v35, %v334_v57  ;;  %v431_v3 = vadd.f32 %v631_v35, %v335_v58  ;;  %v337_v4 = vmul.f32 %v624_v49, %v241_v54  ;;  %v466_v8 = vmax.f32 %v426_v60, 0.0 }
  0x2a   : > { %v467_v9 = vmax.f32 %v427_v61, 0.0  ;;  %v468_v10 = vmax.f32 %v428_v62, 0.0  ;;  %v432_v11 = vadd.f32 %v632_v59, %v336_v63  ;;  %v469_v15 = vmax.f32 %v429_v1, 0.0 }
  0x2b   : > { %v470_v16 = vmax.f32 %v430_v2, 0.0  ;;  %v471_v17 = vmax.f32 %v431_v3, 0.0  ;;  %v433_v18 = vadd.f32 %v632_v59, %v337_v4  ;;  %508 = vst.msk [vmem:[%s757_s5 + $0xc0] sm:$0x1] %vm487_vm1, %v466_v8  ;;  %v338_v21 = vmul.f32 %v624_v49, %v242_v5 }
  0x2c   : > { %509 = vst.msk [vmem:[%s757_s5 + $0xc8] sm:$0xff] %vm482_vm0, %v467_v9  ;;  %510 = vst.msk [vmem:[%s757_s5 + $0xd0] sm:$0xff] %vm482_vm0, %v468_v10  ;;  %v472_v20 = vmax.f32 %v432_v11, 0.0  ;;  %v339_v22 = vmul.f32 %v624_v49, %v243_v6  ;;  %v340_v23 = vmul.f32 %v624_v49, %v244_v7  ;;  %v341_v27 = vmul.f32 %v625_v0, %v245_v12 }
  0x2d   : > { %511 = vst.msk [vmem:[%s757_s5 + $0xd8] sm:$0xff] %vm482_vm0, %v469_v15  ;;  %512 = vst.msk [vmem:[%s757_s5 + $0xe0] sm:$0xff] %vm482_vm0, %v470_v16  ;;  %v473_v26 = vmax.f32 %v433_v18, 0.0  ;;  %v342_v28 = vmul.f32 %v625_v0, %v246_v13  ;;  %v343_v29 = vmul.f32 %v625_v0, %v247_v14  ;;  %v434_v30 = vadd.f32 %v632_v59, %v338_v21 }
  0x2e   : > { %513 = vst.msk [vmem:[%s757_s5 + $0xe8] sm:$0x1] %vm487_vm1, %v471_v17  ;;  %v435_v31 = vadd.f32 %v632_v59, %v339_v22  ;;  %v436_v32 = vadd.f32 %v632_v59, %v340_v23  ;;  %v344_v33 = vmul.f32 %v625_v0, %v248_v19  ;;  %v437_v34 = vadd.f32 %v633_v24, %v341_v27 }
  0x2f   : > { %514 = vst.msk [vmem:[%s757_s5 + $0xf0] sm:$0xff] %vm482_vm0, %v472_v20  ;;  %515 = vst.msk [vmem:[%s757_s5 + $0xf8] sm:$0xff] %vm482_vm0, %v473_v26  ;;  %v438_v35 = vadd.f32 %v633_v24, %v342_v28  ;;  %v439_v36 = vadd.f32 %v633_v24, %v343_v29  ;;  %v345_v37 = vmul.f32 %v625_v0, %v249_v25  ;;  %v474_v38 = vmax.f32 %v434_v30, 0.0 }
  0x30   : > { %v475_v39 = vmax.f32 %v435_v31, 0.0  ;;  %v476_v40 = vmax.f32 %v436_v32, 0.0  ;;  %v440_v41 = vadd.f32 %v633_v24, %v344_v33  ;;  %v477_v42 = vmax.f32 %v437_v34, 0.0 }
  0x31   : > { %v478_v43 = vmax.f32 %v438_v35, 0.0  ;;  %v479_v44 = vmax.f32 %v439_v36, 0.0  ;;  %v441_v45 = vadd.f32 %v633_v24, %v345_v37  ;;  %516 = vst.msk [vmem:[%s757_s5 + $0x100] sm:$0xff] %vm482_vm0, %v474_v38 }
  0x32   : > { %517 = vst.msk [vmem:[%s757_s5 + $0x108] sm:$0xff] %vm482_vm0, %v475_v39  ;;  %v480_v46 = vmax.f32 %v440_v41, 0.0  ;;  %519 = vst.msk [vmem:[%s757_s5 + $0x118] sm:$0xff] %vm482_vm0, %v477_v42 }
  0x33   : > { %518 = vst.msk [vmem:[%s757_s5 + $0x110] sm:$0x1] %vm487_vm1, %v476_v40  ;;  %v481_v47 = vmax.f32 %v441_v45, 0.0 }
  0x34   : > { %520 = vst.msk [vmem:[%s757_s5 + $0x120] sm:$0xff] %vm482_vm0, %v478_v43  ;;  %521 = vst.msk [vmem:[%s757_s5 + $0x128] sm:$0xff] %vm482_vm0, %v479_v44 }
  0x35   : > { %522 = vst.msk [vmem:[%s757_s5 + $0x130] sm:$0xff] %vm482_vm0, %v480_v46 }
  0x36   : > { %523 = vst.msk [vmem:[%s757_s5 + $0x138] sm:$0x1] %vm487_vm1, %v481_v47 }
  0x37 PF: > { %s13_s14 = sadd.s32 1, %s683_s14   ;;  %s924_s12 = smov %s679_s13 }
  0x38   : > { %p10_p5 = scmp.ge.s32.totalorder %s13_s14, 4   ;;  %s925_s13 = smov %s927_s15 }
  0x3a   :  { %12 = sbr.rel (!%p10_p5) target bundleno = 2 (0x2), region = 62 }

</bundles_post_ra>
